<compile_context>
chip_gen: v7x
topology: tpu7x:2x2x1
jax: 0.10.0
libtpu: 0.0.40
codegen_flags: <defaults>
</compile_context>

<pallas_src>
import functools
from itertools import combinations

import numpy as np
import jax
import jax.numpy as jnp
from jax.experimental import pallas as pl
from jax.experimental.pallas import tpu as pltpu


# ----------------------------- Pallas mixture kernel --------------------------


def mixture_kernel(w_ref, bhm_ref, out_ref, *, tb, thn, d):
    """out[i] = sum_h w[b*tb+i, h] * bhm[i, :, h*d:(h+1)*d]   (one grid step).

    w_ref  : SMEM, flat (B*THN,) per-head weights (scalar-prefetched, factor folded in)
    bhm_ref: VMEM block (tb, ts, THN*D) — contiguous full-head slab
    out_ref: VMEM block (tb, ts, D) — written once per grid step (no cross-step carry)
    """
    b = pl.program_id(0)
    for i in range(tb):                                  # static, small (<= 4)
        base = (b * tb + i) * thn
        # First head's term initializes the accumulator (saves zero-store + reload).
        out_ref[i] = w_ref[base] * bhm_ref[i, :, 0:d].astype(jnp.float32)
        for h in range(1, thn):                          # static lane-aligned slices
            out_ref[i] += (
                w_ref[base + h] * bhm_ref[i, :, h * d:(h + 1) * d].astype(jnp.float32)
            )


# ----------------------------- tiling heuristics -------------------------------


def _vmem_capacity_bytes():
    try:
        cap = int(getattr(pltpu.get_tpu_info(), "vmem_capacity_bytes", 0))
        if cap >= (16 << 20):
            return cap
    except Exception:
        pass
    return 64 << 20          # conservative default (v7x per-TC VMEM)


def _choose_tiles(B, S, THN, D, in_itemsize, out_itemsize, vmem_cap):
    budget = (vmem_cap * 3) // 4                              # ~25% headroom
    # Double-buffered input + output block bytes per (b, s) row.
    bytes_per_row = 2 * (THN * in_itemsize + out_itemsize) * D
    rows_cap = max(8, budget // bytes_per_row)

    # Sequence tile: largest multiple-of-8 divisor of S up to the cap.
    # 512 keeps in-kernel intermediates modest on every generation
    # (measured 512 vs 1024 tiles ~= 1% at the HBM roofline).
    ts_cap = int(min(rows_cap, 512, S))
    if S % 8 == 0:
        ts = 8
        for c in range(8, ts_cap + 1, 8):
            if S % c == 0:
                ts = c
    else:
        ts = S              # full-dim block (caller pre-pads very large awkward S)

    # Batch packing: amortize per-grid-step overhead, but never collapse the
    # parallel grid below 2 blocks (v7x has 2 TensorCores) and keep the unrolled
    # in-kernel row loop short (<= 4 rows * 12 heads statements).
    tb = 1
    rows_left = max(1, rows_cap // ts)
    for c in range(2, min(B, rows_left, 4) + 1):
        if B % c == 0 and (B // c) * (S // ts) >= 2:
            tb = c
    return tb, ts


# ----------------------------- wrappers ---------------------------------------


def _mixture(head_w, bhm):
    """head_w: (B, THN) per-head weights (scaleup factor already folded in).
    bhm: (B, S, THN, D) in its original layout.  Returns (B, S, D) float32."""
    B, S0, THN, D = bhm.shape
    assert D % 128 == 0, "head_dim must be a multiple of 128 (lane aligned)"

    # Rare robustness path: large S with no usable multiple-of-8 tile -> zero-pad.
    if S0 % 8 != 0 and S0 > 512:
        S = ((S0 + 7) // 8) * 8
        bhm = jnp.pad(bhm, ((0, 0), (0, S - S0), (0, 0), (0, 0)))
    else:
        S = S0

    in_itemsize = jnp.dtype(bhm.dtype).itemsize
    vmem_cap = _vmem_capacity_bytes()
    tb, ts = _choose_tiles(B, S, THN, D, in_itemsize, 4, vmem_cap)
    gb, gs = B // tb, S // ts

    bhm_flat = bhm.reshape(B, S, THN * D)        # free reshape, no data movement

    in_block = tb * ts * THN * D * in_itemsize
    out_block = tb * ts * D * 4
    vmem_limit = 2 * (in_block + out_block) + (8 << 20)
    vmem_limit = int(max(16 << 20, min(vmem_limit, (vmem_cap * 9) // 10)))

    kernel = functools.partial(mixture_kernel, tb=tb, thn=THN, d=D)
    out = pl.pallas_call(
        kernel,
        out_shape=jax.ShapeDtypeStruct((B, S, D), jnp.float32),
        grid_spec=pltpu.PrefetchScalarGridSpec(
            num_scalar_prefetch=1,               # flat (B*THN,) weights -> SMEM
            grid=(gb, gs),
            in_specs=[pl.BlockSpec((tb, ts, THN * D), lambda b, s, w: (b, s, 0))],
            out_specs=pl.BlockSpec((tb, ts, D), lambda b, s, w: (b, s, 0)),
        ),
        compiler_params=pltpu.CompilerParams(
            dimension_semantics=("parallel", "parallel"),
            vmem_limit_bytes=vmem_limit),
    )(head_w.reshape(-1).astype(jnp.float32), bhm_flat)

    return out if S == S0 else out[:, :S0]


def _gating(params, member, x):
    """Tiny (B,32)@(32,12) + (B,12)@(12,12) MLP: plain XLA per perf review — a
    separate pallas_call only adds launch overhead + an HBM roundtrip of coeff."""
    xm = jnp.mean(x, axis=1)                                       # (B, H)
    h1 = xm @ params["w1"] + params["b1"]                          # (B, G)
    h1a = jax.nn.gelu(h1, approximate=False)                       # exact erf gelu (torch default)
    logits = h1a @ params["w2"] + params["b2"]                     # (B, G)
    prob = jax.nn.softmax(logits, axis=-1)
    coeff = prob @ member                                          # (B, THN)
    return prob, coeff, logits


def mixture_of_expert_forward(params, member, factor, input_data_seq,
                              batch_head_matrix, evaluate=False,
                              every_five_steps=False, rng=None):
    prob, coeff, logits = _gating(params, member, input_data_seq)
    THN = batch_head_matrix.shape[2]
    if evaluate or every_five_steps:
        head_w = coeff                                             # (B, THN)
    else:
        # TODO(synk): torch samples with Categorical(prob) under torch's RNG stream;
        # we sample the same distribution via jax.random.categorical on the
        # pre-softmax logits (numerically safer than log(prob)); torch RNG bits
        # cannot be reproduced.
        idx = jax.random.categorical(rng, logits, axis=-1)         # (B,)
        head_w = 1.0 - jax.nn.one_hot(idx, THN, dtype=jnp.float32)  # drop sampled head
    head_w = head_w * jnp.float32(factor)          # fold scaleup factor into weights
    prob_matrix = _mixture(head_w, batch_head_matrix)
    return prob, prob_matrix, batch_head_matrix


def init_params(key, hidden_size, num_groups):
    # Deterministic synthetic init (torch Linear-style uniform bounds).
    k1, k2, k3, k4 = jax.random.split(key, 4)
    lim1 = 1.0 / np.sqrt(hidden_size)
    lim2 = 1.0 / np.sqrt(num_groups)
    return dict(
        w1=jax.random.uniform(k1, (hidden_size, num_groups), jnp.float32, -lim1, lim1),
        b1=jax.random.uniform(k2, (1, num_groups), jnp.float32, -lim1, lim1),
        w2=jax.random.uniform(k3, (num_groups, num_groups), jnp.float32, -lim2, lim2),
        b2=jax.random.uniform(k4, (1, num_groups), jnp.float32, -lim2, lim2),
    )


def reference_evaluate(params, x, bhm, index_groups, factor):
    # Pure-JAX replica of the torch evaluate/every_five_steps branch.
    xm = jnp.mean(x, axis=1)
    h1 = xm @ params["w1"] + params["b1"]
    g = 0.5 * h1 * (1.0 + jax.lax.erf(h1 / jnp.sqrt(2.0)))
    h2 = g @ params["w2"] + params["b2"]
    prob = jax.nn.softmax(h2, axis=-1)
    scaleup = factor * bhm
    terms = []
    for i in range(12):
        sel = scaleup[:, :, index_groups[i], :]                    # (B, S, per_head, D)
        terms.append(jnp.sum(prob[:, i, None, None, None] * sel, axis=-2))
    return prob, jnp.sum(jnp.stack(terms), axis=0)


if __name__ == "__main__":
    # Module config implied by the forward: 12 experts (range(12)), each keeping
    # per_head_num = total_head_num - 1 heads.
    hidden_size, num_groups, per_head_num, total_head_num = 32, 12, 11, 12
    B, S, D = 2, 8, 128
    factor = total_head_num / per_head_num

    index_groups = np.array(
        list(map(list, combinations(range(num_groups), per_head_num))), dtype=np.int32)
    member = np.zeros((num_groups, total_head_num), dtype=np.float32)
    for i in range(12):                      # forward hardcodes 12 experts; C(12,11)==12
        member[i, index_groups[i]] = 1.0
    member = jnp.asarray(member)

    key = jax.random.PRNGKey(0)
    kx, kb, kp, ks = jax.random.split(key, 4)
    x = jax.random.normal(kx, (B, S, hidden_size), jnp.float32)
    bhm = jax.random.normal(kb, (B, S, total_head_num, D), jnp.float32)
    params = init_params(kp, hidden_size, num_groups)

    # Deterministic (evaluate=True / every_five_steps=True) path.
    prob, prob_matrix, bhm_out = mixture_of_expert_forward(
        params, member, factor, x, bhm, evaluate=True)
    jax.block_until_ready((prob, prob_matrix, bhm_out))

    # Check against a pure-JAX replica of the torch math.
    ref_prob, ref_pm = reference_evaluate(params, x, bhm, index_groups, factor)
    assert np.allclose(np.asarray(prob), np.asarray(ref_prob), atol=1e-3, rtol=1e-3)
    assert np.allclose(np.asarray(prob_matrix), np.asarray(ref_pm), atol=1e-3, rtol=1e-3)

    # Default (Categorical-sampling) path — exercises the same mixture kernel with
    # factor * (1 - onehot(sampled_head)) weights.
    _, pm_sampled, _ = mixture_of_expert_forward(params, member, factor, x, bhm, rng=ks)
    jax.block_until_ready(pm_sampled)

    print("KERNEL_OK")
</pallas_src>

<mosaic_0001>
module attributes {stable_mosaic.version = 11 : i64} {
  func.func @mixture_kernel(%arg0: i32, %arg1: i32, %arg2: memref<24xf32, #tpu.memory_space<smem>>, %arg3: memref<1x8x1536xf32, #tpu.memory_space<vmem>>, %arg4: memref<1x8x128xf32, #tpu.memory_space<vmem>>) attributes {dimension_semantics = [#tpu.dimension_semantics<parallel>, #tpu.dimension_semantics<parallel>], iteration_bounds = array<i64: 2, 1>, scalar_prefetch = 1 : i64, scratch_operands = 0 : i64, tpu.core_type = #tpu.core_type<tc>, window_params = [{transform_indices = @transform_0, window_bounds = array<i64: 1, 8, 1536>}, {transform_indices = @transform_1, window_bounds = array<i64: 1, 8, 128>}]} {
    %c1_i32 = arith.constant 1 : i32
    %0 = arith.muli %arg0, %c1_i32 : i32
    %c0_i32 = arith.constant 0 : i32
    %1 = arith.addi %0, %c0_i32 : i32
    %c12_i32 = arith.constant 12 : i32
    %2 = arith.muli %1, %c12_i32 : i32
    %3 = arith.index_cast %2 : i32 to index
    %4 = memref.load %arg2[%3] : memref<24xf32, #tpu.memory_space<smem>>
    %c0 = arith.constant 0 : index
    %c0_0 = arith.constant 0 : index
    %c0_1 = arith.constant 0 : index
    %5 = vector.load %arg3[%c0, %c0_0, %c0_1] : memref<1x8x1536xf32, #tpu.memory_space<vmem>>, vector<1x8x128xf32>
    %6 = vector.shape_cast %5 : vector<1x8x128xf32> to vector<8x128xf32>
    %7 = vector.broadcast %4 : f32 to vector<8x128xf32>
    %8 = arith.mulf %7, %6 : vector<8x128xf32>
    %c0_2 = arith.constant 0 : index
    %c0_3 = arith.constant 0 : index
    %c0_4 = arith.constant 0 : index
    %9 = vector.load %arg4[%c0_2, %c0_3, %c0_4] : memref<1x8x128xf32, #tpu.memory_space<vmem>>, vector<1x8x128xf32>
    %10 = vector.shape_cast %9 : vector<1x8x128xf32> to vector<8x128xf32>
    %11 = vector.shape_cast %8 : vector<8x128xf32> to vector<1x8x128xf32>
    tpu.vector_store %arg4[%c0_2, %c0_3, %c0_4], %11 {strides = array<i32>} : memref<1x8x128xf32, #tpu.memory_space<vmem>>, vector<1x8x128xf32>,
    %c0_5 = arith.constant 0 : index
    %c0_6 = arith.constant 0 : index
    %c0_7 = arith.constant 0 : index
    %12 = vector.load %arg4[%c0_5, %c0_6, %c0_7] : memref<1x8x128xf32, #tpu.memory_space<vmem>>, vector<1x8x128xf32>
    %13 = vector.shape_cast %12 : vector<1x8x128xf32> to vector<8x128xf32>
    %c1_i32_8 = arith.constant 1 : i32
    %14 = arith.addi %2, %c1_i32_8 : i32
    %15 = arith.index_cast %14 : i32 to index
    %16 = memref.load %arg2[%15] : memref<24xf32, #tpu.memory_space<smem>>
    %c0_9 = arith.constant 0 : index
    %c0_10 = arith.constant 0 : index
    %c128 = arith.constant 128 : index
    %17 = vector.load %arg3[%c0_9, %c0_10, %c128] : memref<1x8x1536xf32, #tpu.memory_space<vmem>>, vector<1x8x128xf32>
    %18 = vector.shape_cast %17 : vector<1x8x128xf32> to vector<8x128xf32>
    %19 = vector.broadcast %16 : f32 to vector<8x128xf32>
    %20 = arith.mulf %19, %18 : vector<8x128xf32>
    %21 = arith.addf %13, %20 : vector<8x128xf32>
    %c0_11 = arith.constant 0 : index
    %c0_12 = arith.constant 0 : index
    %c0_13 = arith.constant 0 : index
    %22 = vector.load %arg4[%c0_11, %c0_12, %c0_13] : memref<1x8x128xf32, #tpu.memory_space<vmem>>, vector<1x8x128xf32>
    %23 = vector.shape_cast %22 : vector<1x8x128xf32> to vector<8x128xf32>
    %24 = vector.shape_cast %21 : vector<8x128xf32> to vector<1x8x128xf32>
    tpu.vector_store %arg4[%c0_11, %c0_12, %c0_13], %24 {strides = array<i32>} : memref<1x8x128xf32, #tpu.memory_space<vmem>>, vector<1x8x128xf32>,
    %c0_14 = arith.constant 0 : index
    %c0_15 = arith.constant 0 : index
    %c0_16 = arith.constant 0 : index
    %25 = vector.load %arg4[%c0_14, %c0_15, %c0_16] : memref<1x8x128xf32, #tpu.memory_space<vmem>>, vector<1x8x128xf32>
    %26 = vector.shape_cast %25 : vector<1x8x128xf32> to vector<8x128xf32>
    %c2_i32 = arith.constant 2 : i32
    %27 = arith.addi %2, %c2_i32 : i32
    %28 = arith.index_cast %27 : i32 to index
    %29 = memref.load %arg2[%28] : memref<24xf32, #tpu.memory_space<smem>>
    %c0_17 = arith.constant 0 : index
    %c0_18 = arith.constant 0 : index
    %c256 = arith.constant 256 : index
    %30 = vector.load %arg3[%c0_17, %c0_18, %c256] : memref<1x8x1536xf32, #tpu.memory_space<vmem>>, vector<1x8x128xf32>
    %31 = vector.shape_cast %30 : vector<1x8x128xf32> to vector<8x128xf32>
    %32 = vector.broadcast %29 : f32 to vector<8x128xf32>
    %33 = arith.mulf %32, %31 : vector<8x128xf32>
    %34 = arith.addf %26, %33 : vector<8x128xf32>
    %c0_19 = arith.constant 0 : index
    %c0_20 = arith.constant 0 : index
    %c0_21 = arith.constant 0 : index
    %35 = vector.load %arg4[%c0_19, %c0_20, %c0_21] : memref<1x8x128xf32, #tpu.memory_space<vmem>>, vector<1x8x128xf32>
    %36 = vector.shape_cast %35 : vector<1x8x128xf32> to vector<8x128xf32>
    %37 = vector.shape_cast %34 : vector<8x128xf32> to vector<1x8x128xf32>
    tpu.vector_store %arg4[%c0_19, %c0_20, %c0_21], %37 {strides = array<i32>} : memref<1x8x128xf32, #tpu.memory_space<vmem>>, vector<1x8x128xf32>,
    %c0_22 = arith.constant 0 : index
    %c0_23 = arith.constant 0 : index
    %c0_24 = arith.constant 0 : index
    %38 = vector.load %arg4[%c0_22, %c0_23, %c0_24] : memref<1x8x128xf32, #tpu.memory_space<vmem>>, vector<1x8x128xf32>
    %39 = vector.shape_cast %38 : vector<1x8x128xf32> to vector<8x128xf32>
    %c3_i32 = arith.constant 3 : i32
    %40 = arith.addi %2, %c3_i32 : i32
    %41 = arith.index_cast %40 : i32 to index
    %42 = memref.load %arg2[%41] : memref<24xf32, #tpu.memory_space<smem>>
    %c0_25 = arith.constant 0 : index
    %c0_26 = arith.constant 0 : index
    %c384 = arith.constant 384 : index
    %43 = vector.load %arg3[%c0_25, %c0_26, %c384] : memref<1x8x1536xf32, #tpu.memory_space<vmem>>, vector<1x8x128xf32>
    %44 = vector.shape_cast %43 : vector<1x8x128xf32> to vector<8x128xf32>
    %45 = vector.broadcast %42 : f32 to vector<8x128xf32>
    %46 = arith.mulf %45, %44 : vector<8x128xf32>
    %47 = arith.addf %39, %46 : vector<8x128xf32>
    %c0_27 = arith.constant 0 : index
    %c0_28 = arith.constant 0 : index
    %c0_29 = arith.constant 0 : index
    %48 = vector.load %arg4[%c0_27, %c0_28, %c0_29] : memref<1x8x128xf32, #tpu.memory_space<vmem>>, vector<1x8x128xf32>
    %49 = vector.shape_cast %48 : vector<1x8x128xf32> to vector<8x128xf32>
    %50 = vector.shape_cast %47 : vector<8x128xf32> to vector<1x8x128xf32>
    tpu.vector_store %arg4[%c0_27, %c0_28, %c0_29], %50 {strides = array<i32>} : memref<1x8x128xf32, #tpu.memory_space<vmem>>, vector<1x8x128xf32>,
    %c0_30 = arith.constant 0 : index
    %c0_31 = arith.constant 0 : index
    %c0_32 = arith.constant 0 : index
    %51 = vector.load %arg4[%c0_30, %c0_31, %c0_32] : memref<1x8x128xf32, #tpu.memory_space<vmem>>, vector<1x8x128xf32>
    %52 = vector.shape_cast %51 : vector<1x8x128xf32> to vector<8x128xf32>
    %c4_i32 = arith.constant 4 : i32
    %53 = arith.addi %2, %c4_i32 : i32
    %54 = arith.index_cast %53 : i32 to index
    %55 = memref.load %arg2[%54] : memref<24xf32, #tpu.memory_space<smem>>
    %c0_33 = arith.constant 0 : index
    %c0_34 = arith.constant 0 : index
    %c512 = arith.constant 512 : index
    %56 = vector.load %arg3[%c0_33, %c0_34, %c512] : memref<1x8x1536xf32, #tpu.memory_space<vmem>>, vector<1x8x128xf32>
    %57 = vector.shape_cast %56 : vector<1x8x128xf32> to vector<8x128xf32>
    %58 = vector.broadcast %55 : f32 to vector<8x128xf32>
    %59 = arith.mulf %58, %57 : vector<8x128xf32>
    %60 = arith.addf %52, %59 : vector<8x128xf32>
    %c0_35 = arith.constant 0 : index
    %c0_36 = arith.constant 0 : index
    %c0_37 = arith.constant 0 : index
    %61 = vector.load %arg4[%c0_35, %c0_36, %c0_37] : memref<1x8x128xf32, #tpu.memory_space<vmem>>, vector<1x8x128xf32>
    %62 = vector.shape_cast %61 : vector<1x8x128xf32> to vector<8x128xf32>
    %63 = vector.shape_cast %60 : vector<8x128xf32> to vector<1x8x128xf32>
    tpu.vector_store %arg4[%c0_35, %c0_36, %c0_37], %63 {strides = array<i32>} : memref<1x8x128xf32, #tpu.memory_space<vmem>>, vector<1x8x128xf32>,
    %c0_38 = arith.constant 0 : index
    %c0_39 = arith.constant 0 : index
    %c0_40 = arith.constant 0 : index
    %64 = vector.load %arg4[%c0_38, %c0_39, %c0_40] : memref<1x8x128xf32, #tpu.memory_space<vmem>>, vector<1x8x128xf32>
    %65 = vector.shape_cast %64 : vector<1x8x128xf32> to vector<8x128xf32>
    %c5_i32 = arith.constant 5 : i32
    %66 = arith.addi %2, %c5_i32 : i32
    %67 = arith.index_cast %66 : i32 to index
    %68 = memref.load %arg2[%67] : memref<24xf32, #tpu.memory_space<smem>>
    %c0_41 = arith.constant 0 : index
    %c0_42 = arith.constant 0 : index
    %c640 = arith.constant 640 : index
    %69 = vector.load %arg3[%c0_41, %c0_42, %c640] : memref<1x8x1536xf32, #tpu.memory_space<vmem>>, vector<1x8x128xf32>
    %70 = vector.shape_cast %69 : vector<1x8x128xf32> to vector<8x128xf32>
    %71 = vector.broadcast %68 : f32 to vector<8x128xf32>
    %72 = arith.mulf %71, %70 : vector<8x128xf32>
    %73 = arith.addf %65, %72 : vector<8x128xf32>
    %c0_43 = arith.constant 0 : index
    %c0_44 = arith.constant 0 : index
    %c0_45 = arith.constant 0 : index
    %74 = vector.load %arg4[%c0_43, %c0_44, %c0_45] : memref<1x8x128xf32, #tpu.memory_space<vmem>>, vector<1x8x128xf32>
    %75 = vector.shape_cast %74 : vector<1x8x128xf32> to vector<8x128xf32>
    %76 = vector.shape_cast %73 : vector<8x128xf32> to vector<1x8x128xf32>
    tpu.vector_store %arg4[%c0_43, %c0_44, %c0_45], %76 {strides = array<i32>} : memref<1x8x128xf32, #tpu.memory_space<vmem>>, vector<1x8x128xf32>,
    %c0_46 = arith.constant 0 : index
    %c0_47 = arith.constant 0 : index
    %c0_48 = arith.constant 0 : index
    %77 = vector.load %arg4[%c0_46, %c0_47, %c0_48] : memref<1x8x128xf32, #tpu.memory_space<vmem>>, vector<1x8x128xf32>
    %78 = vector.shape_cast %77 : vector<1x8x128xf32> to vector<8x128xf32>
    %c6_i32 = arith.constant 6 : i32
    %79 = arith.addi %2, %c6_i32 : i32
    %80 = arith.index_cast %79 : i32 to index
    %81 = memref.load %arg2[%80] : memref<24xf32, #tpu.memory_space<smem>>
    %c0_49 = arith.constant 0 : index
    %c0_50 = arith.constant 0 : index
    %c768 = arith.constant 768 : index
    %82 = vector.load %arg3[%c0_49, %c0_50, %c768] : memref<1x8x1536xf32, #tpu.memory_space<vmem>>, vector<1x8x128xf32>
    %83 = vector.shape_cast %82 : vector<1x8x128xf32> to vector<8x128xf32>
    %84 = vector.broadcast %81 : f32 to vector<8x128xf32>
    %85 = arith.mulf %84, %83 : vector<8x128xf32>
    %86 = arith.addf %78, %85 : vector<8x128xf32>
    %c0_51 = arith.constant 0 : index
    %c0_52 = arith.constant 0 : index
    %c0_53 = arith.constant 0 : index
    %87 = vector.load %arg4[%c0_51, %c0_52, %c0_53] : memref<1x8x128xf32, #tpu.memory_space<vmem>>, vector<1x8x128xf32>
    %88 = vector.shape_cast %87 : vector<1x8x128xf32> to vector<8x128xf32>
    %89 = vector.shape_cast %86 : vector<8x128xf32> to vector<1x8x128xf32>
    tpu.vector_store %arg4[%c0_51, %c0_52, %c0_53], %89 {strides = array<i32>} : memref<1x8x128xf32, #tpu.memory_space<vmem>>, vector<1x8x128xf32>,
    %c0_54 = arith.constant 0 : index
    %c0_55 = arith.constant 0 : index
    %c0_56 = arith.constant 0 : index
    %90 = vector.load %arg4[%c0_54, %c0_55, %c0_56] : memref<1x8x128xf32, #tpu.memory_space<vmem>>, vector<1x8x128xf32>
    %91 = vector.shape_cast %90 : vector<1x8x128xf32> to vector<8x128xf32>
    %c7_i32 = arith.constant 7 : i32
    %92 = arith.addi %2, %c7_i32 : i32
    %93 = arith.index_cast %92 : i32 to index
    %94 = memref.load %arg2[%93] : memref<24xf32, #tpu.memory_space<smem>>
    %c0_57 = arith.constant 0 : index
    %c0_58 = arith.constant 0 : index
    %c896 = arith.constant 896 : index
    %95 = vector.load %arg3[%c0_57, %c0_58, %c896] : memref<1x8x1536xf32, #tpu.memory_space<vmem>>, vector<1x8x128xf32>
    %96 = vector.shape_cast %95 : vector<1x8x128xf32> to vector<8x128xf32>
    %97 = vector.broadcast %94 : f32 to vector<8x128xf32>
    %98 = arith.mulf %97, %96 : vector<8x128xf32>
    %99 = arith.addf %91, %98 : vector<8x128xf32>
    %c0_59 = arith.constant 0 : index
    %c0_60 = arith.constant 0 : index
    %c0_61 = arith.constant 0 : index
    %100 = vector.load %arg4[%c0_59, %c0_60, %c0_61] : memref<1x8x128xf32, #tpu.memory_space<vmem>>, vector<1x8x128xf32>
    %101 = vector.shape_cast %100 : vector<1x8x128xf32> to vector<8x128xf32>
    %102 = vector.shape_cast %99 : vector<8x128xf32> to vector<1x8x128xf32>
    tpu.vector_store %arg4[%c0_59, %c0_60, %c0_61], %102 {strides = array<i32>} : memref<1x8x128xf32, #tpu.memory_space<vmem>>, vector<1x8x128xf32>,
    %c0_62 = arith.constant 0 : index
    %c0_63 = arith.constant 0 : index
    %c0_64 = arith.constant 0 : index
    %103 = vector.load %arg4[%c0_62, %c0_63, %c0_64] : memref<1x8x128xf32, #tpu.memory_space<vmem>>, vector<1x8x128xf32>
    %104 = vector.shape_cast %103 : vector<1x8x128xf32> to vector<8x128xf32>
    %c8_i32 = arith.constant 8 : i32
    %105 = arith.addi %2, %c8_i32 : i32
    %106 = arith.index_cast %105 : i32 to index
    %107 = memref.load %arg2[%106] : memref<24xf32, #tpu.memory_space<smem>>
    %c0_65 = arith.constant 0 : index
    %c0_66 = arith.constant 0 : index
    %c1024 = arith.constant 1024 : index
    %108 = vector.load %arg3[%c0_65, %c0_66, %c1024] : memref<1x8x1536xf32, #tpu.memory_space<vmem>>, vector<1x8x128xf32>
    %109 = vector.shape_cast %108 : vector<1x8x128xf32> to vector<8x128xf32>
    %110 = vector.broadcast %107 : f32 to vector<8x128xf32>
    %111 = arith.mulf %110, %109 : vector<8x128xf32>
    %112 = arith.addf %104, %111 : vector<8x128xf32>
    %c0_67 = arith.constant 0 : index
    %c0_68 = arith.constant 0 : index
    %c0_69 = arith.constant 0 : index
    %113 = vector.load %arg4[%c0_67, %c0_68, %c0_69] : memref<1x8x128xf32, #tpu.memory_space<vmem>>, vector<1x8x128xf32>
    %114 = vector.shape_cast %113 : vector<1x8x128xf32> to vector<8x128xf32>
    %115 = vector.shape_cast %112 : vector<8x128xf32> to vector<1x8x128xf32>
    tpu.vector_store %arg4[%c0_67, %c0_68, %c0_69], %115 {strides = array<i32>} : memref<1x8x128xf32, #tpu.memory_space<vmem>>, vector<1x8x128xf32>,
    %c0_70 = arith.constant 0 : index
    %c0_71 = arith.constant 0 : index
    %c0_72 = arith.constant 0 : index
    %116 = vector.load %arg4[%c0_70, %c0_71, %c0_72] : memref<1x8x128xf32, #tpu.memory_space<vmem>>, vector<1x8x128xf32>
    %117 = vector.shape_cast %116 : vector<1x8x128xf32> to vector<8x128xf32>
    %c9_i32 = arith.constant 9 : i32
    %118 = arith.addi %2, %c9_i32 : i32
    %119 = arith.index_cast %118 : i32 to index
    %120 = memref.load %arg2[%119] : memref<24xf32, #tpu.memory_space<smem>>
    %c0_73 = arith.constant 0 : index
    %c0_74 = arith.constant 0 : index
    %c1152 = arith.constant 1152 : index
    %121 = vector.load %arg3[%c0_73, %c0_74, %c1152] : memref<1x8x1536xf32, #tpu.memory_space<vmem>>, vector<1x8x128xf32>
    %122 = vector.shape_cast %121 : vector<1x8x128xf32> to vector<8x128xf32>
    %123 = vector.broadcast %120 : f32 to vector<8x128xf32>
    %124 = arith.mulf %123, %122 : vector<8x128xf32>
    %125 = arith.addf %117, %124 : vector<8x128xf32>
    %c0_75 = arith.constant 0 : index
    %c0_76 = arith.constant 0 : index
    %c0_77 = arith.constant 0 : index
    %126 = vector.load %arg4[%c0_75, %c0_76, %c0_77] : memref<1x8x128xf32, #tpu.memory_space<vmem>>, vector<1x8x128xf32>
    %127 = vector.shape_cast %126 : vector<1x8x128xf32> to vector<8x128xf32>
    %128 = vector.shape_cast %125 : vector<8x128xf32> to vector<1x8x128xf32>
    tpu.vector_store %arg4[%c0_75, %c0_76, %c0_77], %128 {strides = array<i32>} : memref<1x8x128xf32, #tpu.memory_space<vmem>>, vector<1x8x128xf32>,
    %c0_78 = arith.constant 0 : index
    %c0_79 = arith.constant 0 : index
    %c0_80 = arith.constant 0 : index
    %129 = vector.load %arg4[%c0_78, %c0_79, %c0_80] : memref<1x8x128xf32, #tpu.memory_space<vmem>>, vector<1x8x128xf32>
    %130 = vector.shape_cast %129 : vector<1x8x128xf32> to vector<8x128xf32>
    %c10_i32 = arith.constant 10 : i32
    %131 = arith.addi %2, %c10_i32 : i32
    %132 = arith.index_cast %131 : i32 to index
    %133 = memref.load %arg2[%132] : memref<24xf32, #tpu.memory_space<smem>>
    %c0_81 = arith.constant 0 : index
    %c0_82 = arith.constant 0 : index
    %c1280 = arith.constant 1280 : index
    %134 = vector.load %arg3[%c0_81, %c0_82, %c1280] : memref<1x8x1536xf32, #tpu.memory_space<vmem>>, vector<1x8x128xf32>
    %135 = vector.shape_cast %134 : vector<1x8x128xf32> to vector<8x128xf32>
    %136 = vector.broadcast %133 : f32 to vector<8x128xf32>
    %137 = arith.mulf %136, %135 : vector<8x128xf32>
    %138 = arith.addf %130, %137 : vector<8x128xf32>
    %c0_83 = arith.constant 0 : index
    %c0_84 = arith.constant 0 : index
    %c0_85 = arith.constant 0 : index
    %139 = vector.load %arg4[%c0_83, %c0_84, %c0_85] : memref<1x8x128xf32, #tpu.memory_space<vmem>>, vector<1x8x128xf32>
    %140 = vector.shape_cast %139 : vector<1x8x128xf32> to vector<8x128xf32>
    %141 = vector.shape_cast %138 : vector<8x128xf32> to vector<1x8x128xf32>
    tpu.vector_store %arg4[%c0_83, %c0_84, %c0_85], %141 {strides = array<i32>} : memref<1x8x128xf32, #tpu.memory_space<vmem>>, vector<1x8x128xf32>,
    %c0_86 = arith.constant 0 : index
    %c0_87 = arith.constant 0 : index
    %c0_88 = arith.constant 0 : index
    %142 = vector.load %arg4[%c0_86, %c0_87, %c0_88] : memref<1x8x128xf32, #tpu.memory_space<vmem>>, vector<1x8x128xf32>
    %143 = vector.shape_cast %142 : vector<1x8x128xf32> to vector<8x128xf32>
    %c11_i32 = arith.constant 11 : i32
    %144 = arith.addi %2, %c11_i32 : i32
    %145 = arith.index_cast %144 : i32 to index
    %146 = memref.load %arg2[%145] : memref<24xf32, #tpu.memory_space<smem>>
    %c0_89 = arith.constant 0 : index
    %c0_90 = arith.constant 0 : index
    %c1408 = arith.constant 1408 : index
    %147 = vector.load %arg3[%c0_89, %c0_90, %c1408] : memref<1x8x1536xf32, #tpu.memory_space<vmem>>, vector<1x8x128xf32>
    %148 = vector.shape_cast %147 : vector<1x8x128xf32> to vector<8x128xf32>
    %149 = vector.broadcast %146 : f32 to vector<8x128xf32>
    %150 = arith.mulf %149, %148 : vector<8x128xf32>
    %151 = arith.addf %143, %150 : vector<8x128xf32>
    %c0_91 = arith.constant 0 : index
    %c0_92 = arith.constant 0 : index
    %c0_93 = arith.constant 0 : index
    %152 = vector.load %arg4[%c0_91, %c0_92, %c0_93] : memref<1x8x128xf32, #tpu.memory_space<vmem>>, vector<1x8x128xf32>
    %153 = vector.shape_cast %152 : vector<1x8x128xf32> to vector<8x128xf32>
    %154 = vector.shape_cast %151 : vector<8x128xf32> to vector<1x8x128xf32>
    tpu.vector_store %arg4[%c0_91, %c0_92, %c0_93], %154 {strides = array<i32>} : memref<1x8x128xf32, #tpu.memory_space<vmem>>, vector<1x8x128xf32>,
    return
  }
  func.func @transform_0(%arg0: i32, %arg1: i32, %arg2: memref<24xf32, #tpu.memory_space<smem>>) -> (i32, i32, i32) {
    %c0_i32 = arith.constant 0 : i32
    %c0_i32_0 = arith.constant 0 : i32
    return %arg0, %arg1, %c0_i32 : i32, i32, i32
  }
  func.func @transform_1(%arg0: i32, %arg1: i32, %arg2: memref<24xf32, #tpu.memory_space<smem>>) -> (i32, i32, i32) {
    %c0_i32 = arith.constant 0 : i32
    %c0_i32_0 = arith.constant 0 : i32
    return %arg0, %arg1, %c0_i32 : i32, i32, i32
  }
}

</mosaic_0001>

<bundles_post_ra>
// kernel: tpu_custom_call.1
= control target key start
LH: loop header
LB: loop body
LE: loop exit
PB: predicated region body
PF: predicated region fallthrough
CT: control target
= control target key end

     0   :  { %s789_s0 = inlined_call_operand.hbm [shape: f32[24], index: 0, kind: input, shape index: {}]   ;;  %s790_s1 = inlined_call_operand.hbm [shape: f32[2,8,1536], index: 1, kind: input, shape index: {}]   ;;  %s791_s2 = inlined_call_operand.hbm [shape: f32[2,8,128], index: 2, kind: output, shape index: {}]  }
   0x1   :  { %s424_s11 = scalar_lea.hbm %s789_s0, 16 }
   0x2   :  { %p425_p0 = scmp.ne.s32.totalorder %s789_s0, %s424_s11  ;;  %p428_p1 = scmp.lt.u32.totalorder %s424_s11, %s789_s0 }
   0x4   :  { %p430_p2 = pnand %p428_p1, %p425_p0 }
   0x6   :  { %433 = shalt.err (!%p430_p2)  }
   0x7   :  { %s550_s16 = smov [#allocation3]  }
   0x8   :  { %8 = dma.hbm_to_smem %s789_s0, 16, %s550_s16, [#allocation2] }
   0x9   :  { %516 = dma.done.wait [#allocation2], 16 }
   0xa   :  { %517 = vsyncadd [#allocation2], 4294967280 }
   0xb   :  { %10 = sfence }
   0xc   :  { %11 = vsyncpa [#allocation5], 0 }
   0xd   :  { %13 = vsyncpa [#allocation5 + $0x1], 0 }
   0xe   :  { %14 = vsyncpa [#allocation6], 0 }
   0xf   :  { %16 = vsyncpa [#allocation6 + $0x1], 0  ;;  %s580_s19 = smov 0   ;;  %s582_s20 = smov 0  }
  0x10   :  { %s584_s21 = smov 0   ;;  %s586_s22 = smov 0  }
  0x11   :  { %s588_s23 = smov 0   ;;  %s590_s24 = smov 0  }
  0x12 LB: > { %s347_s0 = sadd.s32 4294967295, %s548_s24   ;;  %s348_s25 = sadd.s32 4294967294, %s548_s24   ;;  %s548_s24 = sphi %s590_s24, %s22_s24   ;;  %s544_s23 = sphi %s588_s23, %s806_s23   ;;  %s540_s22 = sphi %s586_s22, %s805_s22   ;;  %s536_s21 = sphi %s584_s21, %s804_s21   ;;  %s532_s20 = sphi %s582_s20, %s803_s20   ;;  %s528_s19 = sphi %s580_s19, %s802_s19  }
  0x13   : > { %s34_s26 = sadd.s32 1, %s544_s23  ;;  %s43_s27 = sadd.s32 1, %s536_s21 }
  0x14   : > { %p36_p3 = scmp.ge.s32.totalorder %s34_s26, 2  ;;  %p50_p4 = scmp.ne.s32.totalorder %s536_s21, %s532_s20 }
  0x15   : > { %p51_p5 = scmp.eq.s32.totalorder %s548_s24, 0  ;;  %p56_p6 = scmp.ne.s32.totalorder %s532_s20, %s528_s19 }
  0x16   : > { %s808_s26 = smov (%p36_p3, %s34_s26), 0  ;;  %p57_p8 = scmp.eq.s32.totalorder %s347_s0, 0 }
  0x17   : > { %p621_p7 = por %p51_p5, %p50_p4  ;;  %s38_s29 = ssub.s32 %s544_s23, %s808_s26 }
  0x18   : > { %p82_p9 = scmp.eq.s32.totalorder %s347_s0, 1  ;;  %p41_p10 = scmp.eq.s32.totalorder %s38_s29, 0 }
  0x19   : > { %p627_p11 = por %p57_p8, %p56_p6  ;;  %p88_p13 = scmp.eq.s32.totalorder %s348_s25, 1 }
  0x1a   : > { %p631_p12 = por %p82_p9, %p50_p4  ;;  %p373_p2 = scmp.lt.s32.totalorder %s548_s24, 2 }
  0x1b   : > { %s636_s4 = scalar_select %p41_p10, %s536_s21, %s43_s27  }
  0x1c   : > { %s795_s3 = scalar_select %p631_p12, 1, 0 }
  0x1d   : > { %p638_p0 = por %p88_p13, %p56_p6  ;;  %s108_s6 = sand.u32 1, %s536_s21  }
  0x1e   : > { %s358_s7 = smul.u32 96, %s108_s6  ;;  %p648_p3 = pnand %p373_p2, %p621_p7 }
  0x1f   : > { %s796_s5 = scalar_select %p638_p0, 1, 0 }
  0x20   : > { %s359_s8 = smul.u32 1536, %s544_s23  ;;  %s112_s13 = scalar_lea.vmem [#allocation4], %s358_s7 }
  0x21   : > { %s122_s14 = sshll.u32 %s112_s13, 4  ;;  %s109_s15 = scalar_lea.sflag [#allocation5], %s108_s6  ;;  %s658_s14 = int_to_ptr.vmem [resolvable:$true] %s122_s14 }
  0x22   : > { %s656_s12 = scalar_lea.hbm %s790_s1, %s359_s8  ;;  %p436_p6 = pneg %p648_p3 }
  0x23   : > { %s434_s16 = scalar_lea.hbm %s656_s12, 1536  ;;  %s439_s0 = scalar_lea.hbm %s790_s1, 3072 }
  0x24   : > { %p435_p5 = scmp.ne.s32.totalorder %s656_s12, %s434_s16  ;;  %p440_p9 = scmp.lt.u32.totalorder %s656_s12, %s790_s1 }
  0x25   : > { %p441_p10 = scmp.lt.u32.totalorder %s439_s0, %s434_s16  ;;  %p443_p2 = scmp.lt.u32.totalorder %s434_s16, %s656_s12 }
  0x26   : > { %p437_p7 = pnand %p436_p6, %p435_p5 }
  0x27   : > { %p442_p13 = por %p441_p10, %p440_p9 }
  0x28   : > { %p438_p8 = pneg %p437_p7 }
  0x29   : > { %p444_p1 = por %p443_p2, %p442_p13 }
  0x2b   : > { %p445_p4 = pnand %p444_p1, %p438_p8 }
  0x2d   : > { %448 = shalt.err (!%p445_p4)
}
  0x2e   : > { %s449_s28 = scalar_lea.vmem %s658_s14, 1536  ;;  %s551_s29 = smov [#allocation4]  }
  0x2f   : > { %p450_p5 = scmp.ne.s32.totalorder %s658_s14, %s449_s28  ;;  %s454_s6 = sshll.u32 %s551_s29, 4  ;;  %s455_s6 = int_to_ptr.vmem [resolvable:$false] %s454_s6 }
  0x30   : > { %s456_s7 = scalar_lea.vmem %s455_s6, 3072  ;;  %p457_p12 = scmp.lt.s32.totalorder %s658_s14, %s455_s6 }
  0x31   : > { %p452_p7 = pnand %p450_p5, %p436_p6  ;;  %p458_p9 = scmp.lt.s32.totalorder %s456_s7, %s449_s28 }
  0x33   : > { %p453_p0 = pneg %p452_p7  ;;  %p459_p10 = por %p458_p9, %p457_p12 }
  0x35   : > { %p460_p13 = pnand %p459_p10, %p453_p0 }
  0x37   : > { %463 = shalt.err (!%p460_p13)
}
  0x38   : > { %368 = dma.hbm_to_vmem [thread:$0]  (!%p648_p3), %s656_s12, 1536, %s658_s14, %s109_s15  }
  0x39   : > { %p127_p1 = scmp.lt.s32.totalorder %s548_s24, 3  ;;  %p798_p4 = scmp.ge.s32.totalorder %s548_s24, 1 }
  0x3b   : > { %p128_p6 = pnand %p798_p4, %p127_p1 }
  0x3c   : > { %s689_s8 = sand.u32 (!%p128_p6), 1, %s532_s20  }
  0x3d   : > { %131 = sbr.rel (%p128_p6) target bundleno = 117 (0x75), region = 24  ;;  %s134_s11 = scalar_lea.sflag (!%p128_p6), [#allocation5], %s689_s8 }
  0x3e   : > { %s360_s10 = smul.u32 (!%p128_p6), 96, %s689_s8 }
  0x40   : > { %s693_s13 = scalar_lea.vmem (!%p128_p6), [#allocation4], %s360_s10 }
  0x44   : > { %519 = dma.done.wait (%p627_p11), %s134_s11, 1536  }
  0x45   : > { %521 = vsyncadd (%p627_p11), %s134_s11, 4294965760  ;;  %s700_s9 = smul.u32 12, %s540_s22  ;;  %v158_v0 = vld [vmem:[%s693_s13] sm:$0xff]  ;;  %v165_v1 = vld [vmem:[%s693_s13 + $0x8] sm:$0xff]  ;;  %p799_p12 = scmp.ne.s32.totalorder %s795_s3, 0 }
  0x46   : > { %v173_v3 = vld [vmem:[%s693_s13 + $0x10] sm:$0xff]  ;;  %v181_v6 = vld [vmem:[%s693_s13 + $0x18] sm:$0xff]  ;;  %v189_v11 = vld [vmem:[%s693_s13 + $0x20] sm:$0xff] }
  0x47   : > { %s157_s12 = sld [smem:[#allocation3 + %s700_s9]]  ;;  %s163_s14 = sadd.s32 1, %s700_s9  ;;  %v197_v15 = vld [vmem:[%s693_s13 + $0x28] sm:$0xff]  ;;  %v205_v19 = vld [vmem:[%s693_s13 + $0x30] sm:$0xff]  ;;  %v213_v23 = vld [vmem:[%s693_s13 + $0x38] sm:$0xff] }
  0x48   : > { %s164_s15 = sld [smem:[#allocation3 + %s163_s14]]  ;;  %s171_s16 = sadd.s32 2, %s700_s9  ;;  %v221_v27 = vld [vmem:[%s693_s13 + $0x40] sm:$0xff]  ;;  %v229_v31 = vld [vmem:[%s693_s13 + $0x48] sm:$0xff]  ;;  %v237_v35 = vld [vmem:[%s693_s13 + $0x50] sm:$0xff] }
  0x49   : > { %s172_s30 = sld [smem:[#allocation3 + %s171_s16]]  ;;  %s179_s17 = sadd.s32 3, %s700_s9  ;;  %v245_v39 = vld [vmem:[%s693_s13 + $0x58] sm:$0xff] }
  0x4a   : > { %s180_s18 = sld [smem:[#allocation3 + %s179_s17]]  ;;  %s187_s0 = sadd.s32 4, %s700_s9 }
  0x4b   : > { %s188_s25 = sld [smem:[#allocation3 + %s187_s0]]  ;;  %s195_s27 = sadd.s32 5, %s700_s9 }
  0x4c   : > { %s710_s28 = sld [smem:[#allocation3 + %s195_s27]]  ;;  %s203_s29 = sadd.s32 6, %s700_s9 }
  0x4d   : > { %v159_v2 = vstv %s157_s12  ;;  %s714_s6 = sld [smem:[#allocation3 + %s203_s29]]  ;;  %s211_s7 = sadd.s32 7, %s700_s9 }
  0x4e   : > { %v160_v4 = vmul.f32 %v159_v2, %v158_v0  ;;  %v166_v5 = vstv %s164_s15  ;;  %s718_s10 = sld [smem:[#allocation3 + %s211_s7]]  ;;  %s219_s11 = sadd.s32 8, %s700_s9 }
  0x4f   : > { %v167_v7 = vmul.f32 %v166_v5, %v165_v1  ;;  %v174_v8 = vstv %s172_s30  ;;  %s227_s14 = sadd.s32 9, %s700_s9  ;;  %s220_s12 = sld [smem:[#allocation3 + %s219_s11]] }
  0x50   : > { %v175_v9 = vmul.f32 %v174_v8, %v173_v3  ;;  %v182_v10 = vstv %s180_s18  ;;  %s235_s15 = sadd.s32 10, %s700_s9  ;;  %s228_s16 = sld [smem:[#allocation3 + %s227_s14]] }
  0x51   : > { %v168_v12 = vadd.f32 %v167_v7, %v160_v4  ;;  %v183_v13 = vmul.f32 %v182_v10, %v181_v6  ;;  %v190_v14 = vstv %s188_s25  ;;  %s243_s30 = sadd.s32 11, %s700_s9  ;;  %s236_s17 = sld [smem:[#allocation3 + %s235_s15]] }
  0x52   : > { %v198_v16 = vstv %s710_s28  ;;  %v191_v18 = vmul.f32 %v190_v14, %v189_v11  ;;  %s244_s18 = sld [smem:[#allocation3 + %s243_s30]]  ;;  %s353_s9 = sshll.u32 %s689_s8, 3 }
  0x53   : > { %v176_v17 = vadd.f32 %v175_v9, %v168_v12  ;;  %v206_v20 = vstv %s714_s6  ;;  %v199_v22 = vmul.f32 %v198_v16, %v197_v15  ;;  %s355_s0 = sshll.u32 %s540_s22, 7  ;;  %s155_s25 = scalar_lea.vmem [#allocation7], %s353_s9 }
  0x54   : > { %v214_v24 = vstv %s718_s10  ;;  %v207_v26 = vmul.f32 %v206_v20, %v205_v19  ;;  %s265_s27 = sshll.u32 %s155_s25, 4  ;;  %s740_s6 = scalar_lea.hbm %s791_s2, %s355_s0  ;;  %s742_s27 = int_to_ptr.vmem [resolvable:$true] %s265_s27 }
  0x55   : > { %v184_v21 = vadd.f32 %v183_v13, %v176_v17  ;;  %v222_v28 = vstv %s220_s12  ;;  %v215_v30 = vmul.f32 %v214_v24, %v213_v23  ;;  %s251_s13 = scalar_lea.sflag [#allocation6], %s689_s8  ;;  %s464_s7 = scalar_lea.vmem %s742_s27, 128 }
  0x56   : > { %v230_v32 = vstv %s228_s16  ;;  %v223_v34 = vmul.f32 %v222_v28, %v221_v27  ;;  %p465_p11 = scmp.ne.s32.totalorder %s742_s27, %s464_s7  ;;  %s552_s22 = smov [#allocation7]  }
  0x57   : > { %v192_v25 = vadd.f32 %v191_v18, %v184_v21  ;;  %v238_v36 = vstv %s236_s17  ;;  %v231_v38 = vmul.f32 %v230_v32, %v229_v31  ;;  %s468_s10 = sshll.u32 %s552_s22, 4  ;;  %s469_s10 = int_to_ptr.vmem [resolvable:$false] %s468_s10 }
  0x58   : > { %v246_v40 = vstv %s244_s18  ;;  %v239_v42 = vmul.f32 %v238_v36, %v237_v35  ;;  %p466_p0 = pnand %p465_p11, %p799_p12  ;;  %s470_s11 = scalar_lea.vmem %s469_s10, 256 }
  0x59   : > { %v200_v29 = vadd.f32 %v199_v22, %v192_v25  ;;  %v247_v44 = vmul.f32 %v246_v40, %v245_v39  ;;  %p471_p8 = scmp.lt.s32.totalorder %s742_s27, %s469_s10  ;;  %p472_p2 = scmp.lt.s32.totalorder %s470_s11, %s464_s7 }
  0x5a   : > { %p467_p3 = pneg %p466_p0 }
  0x5b   : > { %v208_v33 = vadd.f32 %v207_v26, %v200_v29  ;;  %p473_p5 = por %p472_p2, %p471_p8 }
  0x5d   : > { %v216_v37 = vadd.f32 %v215_v30, %v208_v33  ;;  %p474_p7 = pnand %p473_p5, %p467_p3 }
  0x5f   : > { %v224_v41 = vadd.f32 %v223_v34, %v216_v37 }
  0x61   : > { %v232_v43 = vadd.f32 %v231_v38, %v224_v41 }
  0x63   : > { %v240_v45 = vadd.f32 %v239_v42, %v232_v43 }
  0x65   : > { %v248_v46 = vadd.f32 %v247_v44, %v240_v45 }
  0x67   : > { %249 = vst [vmem:[%s155_s25] sm:$0xff] %v248_v46 }
  0x68   : > { %477 = shalt.err (!%p474_p7)
}
  0x69   : > { %s478_s8 = scalar_lea.hbm %s740_s6, 128  ;;  %s482_s15 = scalar_lea.hbm %s791_s2, 256 }
  0x6a   : > { %p479_p9 = scmp.ne.s32.totalorder %s740_s6, %s478_s8  ;;  %p483_p1 = scmp.lt.u32.totalorder %s740_s6, %s791_s2 }
  0x6b   : > { %p484_p4 = scmp.lt.u32.totalorder %s482_s15, %s478_s8  ;;  %p486_p11 = scmp.lt.u32.totalorder %s478_s8, %s740_s6 }
  0x6c   : > { %p480_p10 = pnand %p479_p9, %p799_p12 }
  0x6d   : > { %p485_p6 = por %p484_p4, %p483_p1 }
  0x6e   : > { %p481_p13 = pneg %p480_p10 }
  0x6f   : > { %p487_p0 = por %p486_p11, %p485_p6 }
  0x71   : > { %p488_p3 = pnand %p487_p0, %p481_p13 }
  0x73   : > { %491 = shalt.err (!%p488_p3)
}
  0x74   : > { %363 = dma.vmem_to_hbm [thread:$0]  (%p799_p12), %s742_s27, 128, %s740_s6, %s251_s13  }
  0x75 PF: > { %s277_s17 = sand.u32 1, %s528_s19   ;;  %p800_p8 = scmp.ne.s32.totalorder %s796_s5, 0 }
  0x76   : > { %p801_p2 = scmp.ge.s32.totalorder %s548_s24, 2  ;;  %s278_s18 = scalar_lea.sflag [#allocation6], %s277_s17 }
  0x78   : > { %p370_p5 = pnand %p801_p2, %p800_p8 }
  0x7a   : > { %523 = dma.done.wait (!%p370_p5), %s278_s18, 128  }
  0x7b   : > { %525 = vsyncadd (!%p370_p5), %s278_s18, 4294967168  ;;  %s22_s24 = sadd.s32 1, %s548_s24   ;;  %s802_s19 = smov %s532_s20 }
  0x7c   : > { %p19_p7 = scmp.ge.s32.totalorder %s22_s24, 4   ;;  %s803_s20 = smov %s536_s21 }
  0x7d   : > { %s804_s21 = smov %s636_s4  ;;  %s805_s22 = smov %s544_s23 }
  0x7e   : > { %s806_s23 = smov %s808_s26  ;;  %21 = sbr.rel (!%p19_p7) target bundleno = 18 (0x12), region = 69 }
  0x85   :  { %283 = vsyncpa [#allocation5], 1 }
  0x86   :  { %285 = vsyncpa [#allocation5 + $0x1], 1 }
  0x87   :  { %286 = vsyncpa [#allocation6], 1 }
  0x88   :  { %288 = vsyncpa [#allocation6 + $0x1], 1 }

</bundles_post_ra>
